<compile_context>
chip_gen: v7x
topology: tpu7x:2x2x1
jax: 0.10.0
libtpu: 0.0.40
codegen_flags: <defaults>
</compile_context>

<pallas_src>
import jax
import jax.numpy as jnp
from jax.experimental import pallas as pl
from jax.experimental.pallas import tpu as pltpu

_LANE = 128
_MAX_HW_TILE = 8192                    # ~128 KiB/buffer at C=4 f32
_DEFAULT_MIN_PALLAS_BYTES = 1 << 20    # below this, XLA's fused softmax wins


def _softmax_c_kernel(x_ref, o_ref):
    # Block: (1, C, T). Numerically stable softmax over axis=1 (channels).
    x = x_ref[...]
    if x.dtype != jnp.float32:
        x = x.astype(jnp.float32)
    m = jnp.max(x, axis=1, keepdims=True)
    e = jnp.exp(x - m)
    s = jnp.sum(e, axis=1, keepdims=True)
    # Approx reciprocal rides the otherwise-idle EUP slot; one Newton step
    # brings the relative error to ~1e-7 so the 1e-5 tolerance still holds.
    inv = pl.reciprocal(s, approx=True)
    inv = inv * (2.0 - s * inv)
    o_ref[...] = (e * inv).astype(o_ref.dtype)


def _round_up(x, m):
    return ((x + m - 1) // m) * m


def _softmax_channels_pallas_3d(x3):
    """Channel softmax on (N, C, HW) via a tiled Pallas kernel."""
    n, c, hw = x3.shape

    # Lane-dense tiling of the flattened spatial axis; the reduction axis (C)
    # stays whole inside every block.
    hw_pad = _round_up(hw, _LANE)
    tile_hw = hw_pad if hw_pad <= _MAX_HW_TILE else _MAX_HW_TILE
    hw_pad = _round_up(hw_pad, tile_hw)
    if hw_pad != hw:
        # Padded columns compute an independent (discarded) softmax over C.
        x3 = jnp.pad(x3, ((0, 0), (0, 0), (0, hw_pad - hw)))

    grid = (n, hw_pad // tile_hw)
    out = pl.pallas_call(
        _softmax_c_kernel,
        out_shape=jax.ShapeDtypeStruct((n, c, hw_pad), x3.dtype),
        grid_spec=pltpu.PrefetchScalarGridSpec(
            num_scalar_prefetch=0,
            grid=grid,
            in_specs=[pl.BlockSpec((1, c, tile_hw), lambda i, j: (i, 0, j))],
            out_specs=pl.BlockSpec((1, c, tile_hw), lambda i, j: (i, 0, j)),
        ),
        compiler_params=pltpu.CompilerParams(
            dimension_semantics=("parallel", "parallel"),
            vmem_limit_bytes=32 << 20,
        ),
    )(x3)

    if hw_pad != hw:
        out = out[:, :, :hw]
    return out


def softmax_channels_nchw(x, *, min_pallas_bytes=_DEFAULT_MIN_PALLAS_BYTES):
    """torch.softmax(x, dim=1) on an NCHW tensor."""
    n, c, h, w = x.shape
    nbytes = x.size * x.dtype.itemsize
    if nbytes < min_pallas_bytes:
        # Tiny tensors: pallas_call fixed overhead dominates; let XLA fuse it.
        return jax.nn.softmax(x, axis=1)
    out3 = _softmax_channels_pallas_3d(x.reshape(n, c, h * w))
    return out3.reshape(n, c, h, w)


class SoftmaxPostProcess:
    """JAX/Pallas port of segment/utils/postprocess.SoftmaxPostProcess."""

    SOFTMAX_KEYS = ("ett", "ngt")

    def __init__(self, min_pallas_bytes=_DEFAULT_MIN_PALLAS_BYTES):
        self.min_pallas_bytes = min_pallas_bytes

    def __call__(self, output, target):
        cls = output["cls"]
        keys = [k for k in cls if k in set(self.SOFTMAX_KEYS)]
        new_cls = dict(cls)

        fuse = (
            len(keys) >= 2
            and all(cls[k].shape == cls[keys[0]].shape for k in keys)
            and all(cls[k].dtype == cls[keys[0]].dtype for k in keys)
        )
        if fuse:
            # Single pallas_call for all softmax'd heads: stack along batch.
            stacked = jnp.concatenate([cls[k] for k in keys], axis=0)
            sm = softmax_channels_nchw(
                stacked, min_pallas_bytes=self.min_pallas_bytes)
            n = cls[keys[0]].shape[0]
            for idx, k in enumerate(keys):
                new_cls[k] = sm[idx * n:(idx + 1) * n]
        else:
            for k in keys:
                new_cls[k] = softmax_channels_nchw(
                    cls[k], min_pallas_bytes=self.min_pallas_bytes)

        new_output = dict(output)
        new_output["cls"] = new_cls
        return (new_output, target)


if __name__ == "__main__":
    key = jax.random.PRNGKey(0)
    k1, k2, k3, k4 = jax.random.split(key, 4)

    # Small NCHW logits consistent with a segmentation head: batch=2, C=4, 16x16.
    ett_logits = jax.random.normal(k1, (2, 4, 16, 16), dtype=jnp.float32)
    ngt_logits = jax.random.normal(k2, (2, 4, 16, 16), dtype=jnp.float32)
    other_logits = jax.random.normal(k3, (2, 4, 16, 16), dtype=jnp.float32)
    target = jax.random.randint(k4, (2, 16, 16), 0, 4)

    output = {"cls": {"ett": ett_logits, "ngt": ngt_logits, "other": other_logits}}

    # min_pallas_bytes=0 forces the Pallas path even at these tiny demo shapes
    # (production-sized heads take it automatically).
    postprocess = SoftmaxPostProcess(min_pallas_bytes=0)
    out, tgt = postprocess(output, target)

    jax.block_until_ready(out["cls"]["ett"])
    jax.block_until_ready(out["cls"]["ngt"])

    # Correctness check against the pure-JAX reference (torch.softmax dim=1).
    ref_ett = jax.nn.softmax(ett_logits, axis=1)
    ref_ngt = jax.nn.softmax(ngt_logits, axis=1)
    assert jnp.allclose(out["cls"]["ett"], ref_ett, atol=1e-5, rtol=1e-5)
    assert jnp.allclose(out["cls"]["ngt"], ref_ngt, atol=1e-5, rtol=1e-5)
    # 'other' key must pass through untouched.
    assert jnp.array_equal(out["cls"]["other"], other_logits)
    assert jnp.array_equal(tgt, target)

    print("KERNEL_OK")
</pallas_src>

<mosaic_0001>
module attributes {stable_mosaic.version = 11 : i64} {
  func.func @_softmax_c_kernel(%arg0: i32, %arg1: i32, %arg2: memref<1x4x256xf32, #tpu.memory_space<vmem>>, %arg3: memref<1x4x256xf32, #tpu.memory_space<vmem>>) attributes {dimension_semantics = [#tpu.dimension_semantics<parallel>, #tpu.dimension_semantics<parallel>], iteration_bounds = array<i64: 4, 1>, scalar_prefetch = 0 : i64, scratch_operands = 0 : i64, tpu.core_type = #tpu.core_type<tc>, window_params = [{transform_indices = @transform_0, window_bounds = array<i64: 1, 4, 256>}, {transform_indices = @transform_1, window_bounds = array<i64: 1, 4, 256>}]} {
    %c0 = arith.constant 0 : index
    %c0_0 = arith.constant 0 : index
    %c0_1 = arith.constant 0 : index
    %0 = vector.load %arg2[%c0, %c0_0, %c0_1] : memref<1x4x256xf32, #tpu.memory_space<vmem>>, vector<1x4x256xf32>
    %cst = arith.constant dense<0xFF800000> : vector<1x256xf32>
    %1 = vector.multi_reduction <maximumf>, %0, %cst [1] : vector<1x4x256xf32> to vector<1x256xf32>
    %2 = vector.shape_cast %1 : vector<1x256xf32> to vector<1x1x256xf32>
    %3 = vector.broadcast %2 : vector<1x1x256xf32> to vector<1x4x256xf32>
    %4 = arith.subf %0, %3 : vector<1x4x256xf32>
    %5 = math.exp %4 : vector<1x4x256xf32>
    %cst_2 = arith.constant dense<0.000000e+00> : vector<1x256xf32>
    %6 = vector.multi_reduction <add>, %5, %cst_2 [1] : vector<1x4x256xf32> to vector<1x256xf32>
    %7 = vector.shape_cast %6 : vector<1x256xf32> to vector<1x1x256xf32>
    %8 = tpu.reciprocal %7 {approx = true} : vector<1x1x256xf32> -> vector<1x1x256xf32>
    %9 = arith.mulf %7, %8 : vector<1x1x256xf32>
    %cst_3 = arith.constant 2.000000e+00 : f32
    %10 = vector.broadcast %cst_3 : f32 to vector<1x1x256xf32>
    %11 = arith.subf %10, %9 : vector<1x1x256xf32>
    %12 = arith.mulf %8, %11 : vector<1x1x256xf32>
    %13 = vector.broadcast %12 : vector<1x1x256xf32> to vector<1x4x256xf32>
    %14 = arith.mulf %5, %13 : vector<1x4x256xf32>
    %c0_4 = arith.constant 0 : index
    %c0_5 = arith.constant 0 : index
    %c0_6 = arith.constant 0 : index
    %15 = vector.load %arg3[%c0_4, %c0_5, %c0_6] : memref<1x4x256xf32, #tpu.memory_space<vmem>>, vector<1x4x256xf32>
    tpu.vector_store %arg3[%c0_4, %c0_5, %c0_6], %14 {strides = array<i32>} : memref<1x4x256xf32, #tpu.memory_space<vmem>>, vector<1x4x256xf32>,
    return
  }
  func.func @transform_0(%arg0: i32, %arg1: i32) -> (i32, i32, i32) {
    %c0_i32 = arith.constant 0 : i32
    %c0_i32_0 = arith.constant 0 : i32
    return %arg0, %c0_i32, %arg1 : i32, i32, i32
  }
  func.func @transform_1(%arg0: i32, %arg1: i32) -> (i32, i32, i32) {
    %c0_i32 = arith.constant 0 : i32
    %c0_i32_0 = arith.constant 0 : i32
    return %arg0, %c0_i32, %arg1 : i32, i32, i32
  }
}

</mosaic_0001>

<bundles_post_ra>
// kernel: tpu_custom_call.1
= control target key start
LH: loop header
LB: loop body
LE: loop exit
PB: predicated region body
PF: predicated region fallthrough
CT: control target
= control target key end

     0   :  { %6 = vsyncpa [#allocation3], 0  ;;  %s701_s0 = inlined_call_operand.hbm [shape: f32[4,4,256], index: 0, kind: input, shape index: {}]   ;;  %s702_s1 = inlined_call_operand.hbm [shape: f32[4,4,256], index: 1, kind: output, shape index: {}]  }
   0x1   :  { %8 = vsyncpa [#allocation3 + $0x1], 0 }
   0x2   :  { %9 = vsyncpa [#allocation4], 0 }
   0x3   :  { %11 = vsyncpa [#allocation4 + $0x1], 0  ;;  %s523_s6 = smov 0   ;;  %s525_s7 = smov 0  }
   0x4   :  { %s527_s8 = smov 0   ;;  %s529_s9 = smov 0  }
   0x5   :  { %s531_s10 = smov 0   ;;  %s533_s11 = smov 0  }
   0x6 LB: > { %s311_s12 = sadd.s32 4294967295, %s509_s11   ;;  %s312_s13 = sadd.s32 4294967294, %s509_s11   ;;  %s509_s11 = sphi %s533_s11, %s17_s11   ;;  %s505_s10 = sphi %s531_s10, %s717_s10   ;;  %s501_s9 = sphi %s529_s9, %s716_s9   ;;  %s497_s8 = sphi %s527_s8, %s715_s8   ;;  %s493_s7 = sphi %s525_s7, %s714_s7   ;;  %s489_s6 = sphi %s523_s6, %s713_s6  }
   0x7   : > { %s29_s14 = sadd.s32 1, %s505_s10  ;;  %s38_s15 = sadd.s32 1, %s497_s8 }
   0x8   : > { %p31_p0 = scmp.ge.s32.totalorder %s29_s14, 4  ;;  %p45_p1 = scmp.ne.s32.totalorder %s497_s8, %s493_s7 }
   0x9   : > { %p46_p2 = scmp.eq.s32.totalorder %s509_s11, 0  ;;  %p51_p3 = scmp.ne.s32.totalorder %s493_s7, %s489_s6 }
   0xa   : > { %s719_s14 = smov (%p31_p0, %s29_s14), 0  ;;  %p52_p5 = scmp.eq.s32.totalorder %s311_s12, 0 }
   0xb   : > { %p564_p4 = por %p46_p2, %p45_p1  ;;  %s33_s17 = ssub.s32 %s505_s10, %s719_s14 }
   0xc   : > { %p77_p6 = scmp.eq.s32.totalorder %s311_s12, 3  ;;  %p36_p7 = scmp.eq.s32.totalorder %s33_s17, 0 }
   0xd   : > { %p570_p8 = por %p52_p5, %p51_p3  ;;  %p83_p10 = scmp.eq.s32.totalorder %s312_s13, 3 }
   0xe   : > { %p574_p9 = por %p77_p6, %p45_p1  ;;  %p340_p12 = scmp.lt.s32.totalorder %s509_s11, 4 }
   0xf   : > { %s579_s20 = scalar_select %p36_p7, %s497_s8, %s38_s15  }
  0x10   : > { %s706_s19 = scalar_select %p574_p9, 1, 0 }
  0x11   : > { %p581_p11 = por %p83_p10, %p51_p3  ;;  %s103_s22 = sand.u32 1, %s497_s8  }
  0x12   : > { %s315_s23 = sshll.u32 %s103_s22, 3  ;;  %s326_s24 = sshll.u32 %s505_s10, 7 }
  0x13   : > { %s707_s21 = scalar_select %p581_p11, 1, 0 }
  0x14   : > { %s591_s27 = scalar_lea.hbm %s701_s0, %s326_s24  ;;  %s107_s28 = scalar_lea.vmem [#allocation2], %s315_s23 }
  0x15   : > { %s117_s29 = sshll.u32 %s107_s28, 4  ;;  %p597_p13 = pnand %p340_p12, %p564_p4  ;;  %s593_s29 = int_to_ptr.vmem [resolvable:$true] %s117_s29 }
  0x16   : > { %s104_s2 = scalar_lea.sflag [#allocation3], %s103_s22  ;;  %s397_s3 = scalar_lea.hbm %s591_s27, 128 }
  0x17   : > { %p398_p2 = scmp.ne.s32.totalorder %s591_s27, %s397_s3  ;;  %p399_p3 = pneg %p597_p13 }
  0x18   : > { %s402_s12 = scalar_lea.hbm %s701_s0, 512  ;;  %p403_p4 = scmp.lt.u32.totalorder %s591_s27, %s701_s0 }
  0x19   : > { %p400_p5 = pnand %p399_p3, %p398_p2  ;;  %p404_p7 = scmp.lt.u32.totalorder %s402_s12, %s397_s3 }
  0x1a   : > { %p406_p12 = scmp.lt.u32.totalorder %s397_s3, %s591_s27 }
  0x1b   : > { %p401_p6 = pneg %p400_p5  ;;  %p405_p10 = por %p404_p7, %p403_p4 }
  0x1d   : > { %p407_p0 = por %p406_p12, %p405_p10 }
  0x1f   : > { %p408_p1 = pnand %p407_p0, %p401_p6 }
  0x21   : > { %411 = shalt.err (!%p408_p1)
}
  0x22   : > { %s412_s16 = scalar_lea.vmem %s593_s29, 128  ;;  %s511_s17 = smov [#allocation2]  }
  0x23   : > { %p413_p2 = scmp.ne.s32.totalorder %s593_s29, %s412_s16  ;;  %s417_s22 = sshll.u32 %s511_s17, 4  ;;  %s418_s22 = int_to_ptr.vmem [resolvable:$false] %s417_s22 }
  0x24   : > { %s419_s23 = scalar_lea.vmem %s418_s22, 256  ;;  %p420_p9 = scmp.lt.s32.totalorder %s593_s29, %s418_s22 }
  0x25   : > { %p415_p5 = pnand %p413_p2, %p399_p3  ;;  %p421_p4 = scmp.lt.s32.totalorder %s419_s23, %s412_s16 }
  0x27   : > { %p416_p11 = pneg %p415_p5  ;;  %p422_p7 = por %p421_p4, %p420_p9 }
  0x29   : > { %p423_p10 = pnand %p422_p7, %p416_p11 }
  0x2b   : > { %426 = shalt.err (!%p423_p10)
}
  0x2c   : > { %335 = dma.hbm_to_vmem [thread:$0]  (!%p597_p13), %s591_s27, 128, %s593_s29, %s104_s2  }
  0x2d   : > { %p709_p0 = scmp.lt.s32.totalorder %s509_s11, 5  ;;  %p710_p1 = scmp.ge.s32.totalorder %s509_s11, 1 }
  0x2f   : > { %p123_p3 = pnand %p710_p1, %p709_p0 }
  0x30   : > { %s633_s24 = sand.u32 (!%p123_p3), 1, %s493_s7  }
  0x31   : > { %126 = sbr.rel (%p123_p3) target bundleno = 140 (0x8c), region = 24  ;;  %s319_s25 = sshll.u32 (!%p123_p3), %s633_s24, 3 }
  0x32   : > { %s129_s26 = scalar_lea.sflag (!%p123_p3), [#allocation3], %s633_s24  ;;  %s132_s28 = scalar_lea.vmem (!%p123_p3), [#allocation2], %s319_s25 }
  0x38   : > { %480 = dma.done.wait (%p570_p8), %s129_s26, 128  }
  0x39   : > { %482 = vsyncadd (%p570_p8), %s129_s26, 4294967168  ;;  %vm157_vm0 = vcmask 1043456   ;;  %v153_v0 = vld [vmem:[%s132_s28] sm:$0xff]  ;;  %s150_s18 = scalar_lea.vmem [#allocation5], %s319_s25  ;;  %s327_s29 = sshll.u32 %s501_s9, 7 }
  0x3a   : > { %v155_v1 = vcombine.high %v153_v0, %v153_v0  ;;  %v158_v2 = vsel %vm157_vm0, %v153_v0, -inf  ;;  %s227_s27 = sshll.u32 %s150_s18, 4  ;;  %s655_s3 = scalar_lea.hbm %s702_s1, %s327_s29  ;;  %s650_s27 = int_to_ptr.vmem [resolvable:$true] %s227_s27 }
  0x3b   : > { %v159_v3 = vrot.slane %v158_v2, 4  ;;  %s211_s4 = scalar_lea.sflag [#allocation4], %s633_s24  ;;  %s427_s5 = scalar_lea.vmem %s650_s27, 128 }
  0x3c   : > { %v165_v4 = vsel %vm157_vm0, %v155_v1, -inf  ;;  %p428_p8 = scmp.ne.s32.totalorder %s650_s27, %s427_s5  ;;  %p711_p9 = scmp.ne.s32.totalorder %s706_s19, 0 }
  0x3d   : > { %v160_v5 = vmax.f32 %v158_v2, %v159_v3  ;;  %v166_v6 = vrot.slane %v165_v4, 4  ;;  %s512_s9 = smov [#allocation5]  }
  0x3e   : > { %p429_p11 = pnand %p428_p8, %p711_p9  ;;  %s431_s12 = sshll.u32 %s512_s9, 4  ;;  %s432_s12 = int_to_ptr.vmem [resolvable:$false] %s431_s12 }
  0x3f   : > { %v161_v7 = vrot.slane %v160_v5, 2  ;;  %v167_v8 = vmax.f32 %v165_v4, %v166_v6  ;;  %s433_s13 = scalar_lea.vmem %s432_s12, 256  ;;  %p434_p6 = scmp.lt.s32.totalorder %s650_s27, %s432_s12 }
  0x40   : > { %p430_p13 = pneg %p429_p11  ;;  %p435_p12 = scmp.lt.s32.totalorder %s433_s13, %s427_s5 }
  0x41   : > { %v162_v9 = vmax.f32 %v160_v5, %v161_v7  ;;  %v168_v10 = vrot.slane %v167_v8, 2 }
  0x42   : > { %p436_p2 = por %p435_p12, %p434_p6 }
  0x43   : > { %v163_v11 = vrot.slane %v162_v9, 1  ;;  %v169_v12 = vmax.f32 %v167_v8, %v168_v10 }
  0x44   : > { %p437_p5 = pnand %p436_p2, %p430_p13 }
  0x45   : > { %v164_v13 = vmax.f32 %v162_v9, %v163_v11  ;;  %v170_v14 = vrot.slane %v169_v12, 1 }
  0x47   : > { %v171_v15 = vmax.f32 %v169_v12, %v170_v14 }
  0x49   : > { %v174_v16 = vcombine.low %v164_v13, %v171_v15 }
  0x4b   : > { %v176_v17 = vsub.f32 %v153_v0, %v174_v16 }
  0x4d   : > { %v177_v18 = vmul.f32 1.442695, %v176_v17 }
  0x4f   : > { %391 = vpow2.f32 %v177_v18 }
  0x59   : > { %v392_v19 = vpop.eup %391 }
  0x5a   : > { %v180_v20 = vcombine.high %v392_v19, %v392_v19  ;;  %v182_v21 = vsel %vm157_vm0, %v392_v19, 0.0 }
  0x5b   : > { %v183_v22 = vrot.slane %v182_v21, 4 }
  0x5c   : > { %v189_v23 = vsel %vm157_vm0, %v180_v20, 0.0 }
  0x5d   : > { %v184_v24 = vadd.f32 %v183_v22, %v182_v21  ;;  %v190_v25 = vrot.slane %v189_v23, 4 }
  0x5f   : > { %v185_v26 = vrot.slane %v184_v24, 2  ;;  %v191_v27 = vadd.f32 %v190_v25, %v189_v23 }
  0x61   : > { %v186_v28 = vadd.f32 %v185_v26, %v184_v24  ;;  %v192_v29 = vrot.slane %v191_v27, 2 }
  0x63   : > { %v187_v30 = vrot.slane %v186_v28, 1  ;;  %v193_v31 = vadd.f32 %v192_v29, %v191_v27 }
  0x65   : > { %v188_v32 = vadd.f32 %v187_v30, %v186_v28  ;;  %v194_v33 = vrot.slane %v193_v31, 1 }
  0x67   : > { %v195_v34 = vadd.f32 %v194_v33, %v193_v31  ;;  %393 = vrcp.f32 %v188_v32 }
  0x69   : > { %395 = vrcp.f32 %v195_v34 }
  0x71   : > { %v394_v35 = vpop.eup %393 }
  0x72   : > { %v198_v36 = vmul.f32 %v394_v35, %v188_v32 }
  0x73   : > { %v396_v37 = vpop.eup %395 }
  0x74   : > { %v199_v38 = vmul.f32 %v396_v37, %v195_v34  ;;  %v200_v39 = vsub.f32 2.0, %v198_v36 }
  0x76   : > { %v201_v40 = vsub.f32 2.0, %v199_v38  ;;  %v202_v41 = vmul.f32 %v394_v35, %v200_v39 }
  0x78   : > { %v203_v42 = vmul.f32 %v396_v37, %v201_v40 }
  0x7a   : > { %v206_v43 = vcombine.low %v202_v41, %v203_v42 }
  0x7c   : > { %v208_v44 = vmul.f32 %v392_v19, %v206_v43 }
  0x7e   : > { %209 = vst [vmem:[%s150_s18] sm:$0xff] %v208_v44 }
  0x7f   : > { %440 = shalt.err (!%p437_p5)
}
  0x80   : > { %s441_s15 = scalar_lea.hbm %s655_s3, 128  ;;  %s445_s22 = scalar_lea.hbm %s702_s1, 512 }
  0x81   : > { %p442_p4 = scmp.ne.s32.totalorder %s655_s3, %s441_s15  ;;  %p446_p0 = scmp.lt.u32.totalorder %s655_s3, %s702_s1 }
  0x82   : > { %p447_p1 = scmp.lt.u32.totalorder %s445_s22, %s441_s15  ;;  %p449_p8 = scmp.lt.u32.totalorder %s441_s15, %s655_s3 }
  0x83   : > { %p443_p7 = pnand %p442_p4, %p711_p9 }
  0x84   : > { %p448_p3 = por %p447_p1, %p446_p0 }
  0x85   : > { %p444_p10 = pneg %p443_p7 }
  0x86   : > { %p450_p11 = por %p449_p8, %p448_p3 }
  0x88   : > { %p451_p13 = pnand %p450_p11, %p444_p10 }
  0x8a   : > { %454 = shalt.err (!%p451_p13)
}
  0x8b   : > { %330 = dma.vmem_to_hbm [thread:$0]  (%p711_p9), %s650_s27, 128, %s655_s3, %s211_s4  }
  0x8c PF: > { %p341_p6 = scmp.ge.s32.totalorder %s509_s11, 2  ;;  %s239_s25 = sand.u32 1, %s489_s6  }
  0x8d   : > { %p712_p12 = scmp.ne.s32.totalorder %s707_s21, 0  ;;  %s240_s26 = scalar_lea.sflag [#allocation4], %s239_s25 }
  0x8f   : > { %p337_p2 = pnand %p341_p6, %p712_p12 }
  0x91   : > { %484 = dma.done.wait (!%p337_p2), %s240_s26, 128  }
  0x92   : > { %486 = vsyncadd (!%p337_p2), %s240_s26, 4294967168  ;;  %s17_s11 = sadd.s32 1, %s509_s11   ;;  %s713_s6 = smov %s493_s7 }
  0x93   : > { %p14_p5 = scmp.ge.s32.totalorder %s17_s11, 6   ;;  %s714_s7 = smov %s497_s8 }
  0x94   : > { %s715_s8 = smov %s579_s20  ;;  %s716_s9 = smov %s505_s10 }
  0x95   : > { %s717_s10 = smov %s719_s14  ;;  %16 = sbr.rel (!%p14_p5) target bundleno = 6 (0x6), region = 69 }
  0x9c   :  { %245 = vsyncpa [#allocation3], 1 }
  0x9d   :  { %247 = vsyncpa [#allocation3 + $0x1], 1 }
  0x9e   :  { %248 = vsyncpa [#allocation4], 1 }
  0x9f   :  { %250 = vsyncpa [#allocation4 + $0x1], 1 }

</bundles_post_ra>
